<compile_context>
chip_gen: v7x
topology: tpu7x:2x2x1
jax: 0.10.0
libtpu: 0.0.40
codegen_flags: <defaults>
</compile_context>

<pallas_src>
import functools

import numpy as np
import jax
import jax.numpy as jnp
from jax.experimental import pallas as pl
from jax.experimental.pallas import tpu as pltpu


def fm_kernel(bias_ref, idx_ref, tab_ref, out_ref, *, embed_dim):
    # bias_ref: SMEM (1,)       f32
    # idx_ref : VMEM (F, TB)    int32    -- global vocab indices, batch on lanes
    # tab_ref : VMEM (Dpad, V)  f32/bf16 -- augmented table (emb^T | w | sum_d emb^2 | 0-pad)
    # out_ref : VMEM (1, TB)    f32      -- lane-dense sigmoid scores
    F, TB = idx_ref.shape
    Dpad, V = tab_ref.shape
    D = embed_dim

    idx = idx_ref[...]                                              # (F, TB)
    vocab_iota = jax.lax.broadcasted_iota(jnp.int32, (V, TB), 0)

    # Sum of one-hots over the F fields: F compares + F adds (VPU).  Accumulate
    # in f32 (small integers are exact; v5e has no bf16 VPU) and cast once at
    # the MXU boundary.
    onehot_sum = jnp.zeros((V, TB), jnp.float32)
    for f in range(F):                    # static unroll over the (few) fields
        onehot_sum = onehot_sum + (vocab_iota == idx[f:f + 1, :]).astype(jnp.float32)

    # Single MXU matmul gathers + field-reduces everything at once.
    g = jnp.dot(tab_ref[...], onehot_sum.astype(tab_ref.dtype),
                preferred_element_type=jnp.float32)                 # (Dpad, TB)

    s = g[:D, :]                 # sum_f E[idx_f]                    (D, TB)
    lin = g[D:D + 1, :]          # sum_f w[idx_f]                    (1, TB)
    ssq = g[D + 1:D + 2, :]      # sum_f sum_d E[idx_f]^2            (1, TB)

    fm = 0.5 * (jnp.sum(s * s, axis=0, keepdims=True) - ssq)        # (1, TB)
    out_ref[...] = jax.nn.sigmoid(lin + fm + bias_ref[0])


def _choose_tile(batch, block_b):
    """Lane tile for the batch: multiple of 128; >= 2 grid steps when possible."""
    block_b = max(128, (block_b // 128) * 128)
    b128 = ((max(batch, 1) + 127) // 128) * 128
    if b128 <= 128:
        return 128
    # Ensure at least 2 grid steps so v7x's 2 TensorCores both get work.
    half = max(128, ((b128 // 2) // 128) * 128)
    return min(block_b, half)


def fm_forward(x, emb_table, lin_table, bias, offsets, *, block_b=512,
               table_dtype=jnp.float32):
    """x: int (B, F); returns sigmoid scores of shape (B,) float32."""
    B, F = x.shape
    V, D = emb_table.shape

    # Global vocab indices (tiny int glue).
    idx = (x + offsets[None, :]).astype(jnp.int32)                  # (B, F)

    tb = _choose_tile(B, block_b)
    b_pad = ((B + tb - 1) // tb) * tb
    # Padded rows point at vocab row 0 (valid); their outputs are sliced off.
    idx_t = jnp.pad(idx.T, ((0, 0), (0, b_pad - B)))                # (F, b_pad)

    # Augmented table (D+2 rows, zero-padded to a sublane multiple of 8).
    d_aug = D + 2
    d_pad = ((d_aug + 7) // 8) * 8
    tab = jnp.concatenate(
        [
            emb_table.T.astype(jnp.float32),                               # rows [0, D)
            lin_table.reshape(1, V).astype(jnp.float32),                   # row D
            jnp.sum(emb_table.astype(jnp.float32) ** 2, axis=1)[None, :],  # row D+1
            jnp.zeros((d_pad - d_aug, V), jnp.float32),                    # zero pad
        ],
        axis=0,
    ).astype(table_dtype)                                            # (d_pad, V)

    grid = (b_pad // tb,)
    tab_bytes = d_pad * V * jnp.dtype(table_dtype).itemsize
    cost = pl.CostEstimate(
        flops=int(2 * b_pad * d_pad * V        # single gather matmul
                  + 2 * b_pad * V * F          # one-hot compares + adds
                  + b_pad * (3 * D + 4)),      # s*s, D-reduce, epilogue
        transcendentals=int(b_pad),            # sigmoid
        bytes_accessed=int(b_pad * F * 4 + tab_bytes + b_pad * 4 + 4),
    )

    kernel = functools.partial(fm_kernel, embed_dim=D)

    def build(single_buffer_tables):
        tab_kwargs = {}
        if single_buffer_tables:
            # Grid-invariant table block: no need to double-buffer it (saves
            # resident VMEM, which matters most on v7x's 64 MiB VMEM).
            tab_kwargs = dict(pipeline_mode=pl.Buffered(1))
        return pl.pallas_call(
            kernel,
            out_shape=jax.ShapeDtypeStruct((1, b_pad), jnp.float32),
            grid=grid,
            in_specs=[
                pl.BlockSpec(memory_space=pltpu.MemorySpace.SMEM),         # bias scalar
                pl.BlockSpec((F, tb), lambda i: (0, i)),                   # indices, batch-tiled
                pl.BlockSpec((d_pad, V), lambda i: (0, 0), **tab_kwargs),  # table, VMEM-resident
            ],
            out_specs=pl.BlockSpec((1, tb), lambda i: (0, i)),             # lane-dense output
            compiler_params=pltpu.CompilerParams(
                dimension_semantics=("parallel",),
            ),
            cost_estimate=cost,
        )

    try:
        out = build(True)(bias, idx_t, tab)
    except Exception:
        # pipeline_mode=pl.Buffered(1) unsupported on this jax version; fall back
        # to default (double) buffering of the table block.
        out = build(False)(bias, idx_t, tab)

    return out[0, :B]


def reference_forward(x, emb_table, lin_table, bias, offsets):
    idx = x + offsets[None, :]
    emb = emb_table[idx]
    lin = lin_table[idx, 0]
    linear_term = jnp.sum(lin, axis=1, keepdims=True) + bias[0]
    s = jnp.sum(emb, axis=1)
    ssq = jnp.sum(emb * emb, axis=1)
    fm_term = 0.5 * jnp.sum(s * s - ssq, axis=1, keepdims=True)
    return jax.nn.sigmoid((linear_term + fm_term)[:, 0])


if __name__ == "__main__":
    # Small, module-consistent shapes.
    field_dims = [3, 4, 5, 6]
    num_fields = len(field_dims)
    embed_dim = 32
    vocab = int(np.sum(field_dims))
    offsets = jnp.asarray(
        np.concatenate([[0], np.cumsum(field_dims)[:-1]]), dtype=jnp.int32
    )

    key = jax.random.PRNGKey(0)
    k_emb, k_lin, k_x = jax.random.split(key, 3)

    # Deterministic parameter init (xavier-uniform-ish for embeddings).
    limit = float(np.sqrt(6.0 / (vocab + embed_dim)))
    emb_table = jax.random.uniform(
        k_emb, (vocab, embed_dim), jnp.float32, -limit, limit
    )
    lin_table = jax.random.uniform(k_lin, (vocab, 1), jnp.float32, -0.1, 0.1)
    bias = jnp.zeros((1,), jnp.float32)

    def make_x(batch):
        # Per-field categorical indices in [0, field_dims[f]).
        return jnp.stack(
            [
                jax.random.randint(
                    jax.random.fold_in(k_x, 1000 * batch + f), (batch,), 0, field_dims[f]
                )
                for f in range(num_fields)
            ],
            axis=1,
        ).astype(jnp.int32)

    # 1) Tiny batch (single grid step), exact f32 path.
    x_small = make_x(8)
    out = jax.block_until_ready(fm_forward(x_small, emb_table, lin_table, bias, offsets))
    ref = reference_forward(x_small, emb_table, lin_table, bias, offsets)
    assert out.shape == (8,)
    np.testing.assert_allclose(np.asarray(out), np.asarray(ref), rtol=1e-5, atol=1e-5)

    # 2) Mid batch: exercises a multi-step grid (>= 2 steps for v7x's 2 TCs) and
    #    batch-tail padding, still the exact f32 path.
    x_mid = make_x(300)
    out_mid = jax.block_until_ready(fm_forward(x_mid, emb_table, lin_table, bias, offsets))
    ref_mid = reference_forward(x_mid, emb_table, lin_table, bias, offsets)
    assert out_mid.shape == (300,)
    np.testing.assert_allclose(np.asarray(out_mid), np.asarray(ref_mid), rtol=1e-5, atol=1e-5)

    # 3) bf16-table path (native MXU operands on v6e/v7x): looser tolerance
    #    because the table rounding shifts results by ~1e-3 relative.
    out_bf16 = jax.block_until_ready(
        fm_forward(x_mid, emb_table, lin_table, bias, offsets, table_dtype=jnp.bfloat16)
    )
    np.testing.assert_allclose(np.asarray(out_bf16), np.asarray(ref_mid), rtol=1e-2, atol=1e-2)

    print("KERNEL_OK")
</pallas_src>

<mosaic_0001>
module attributes {stable_mosaic.version = 11 : i64} {
  func.func @fm_kernel(%arg0: i32, %arg1: memref<1xf32, #tpu.memory_space<smem>>, %arg2: memref<4x128xi32, #tpu.memory_space<vmem>>, %arg3: memref<40x18xf32, #tpu.memory_space<vmem>>, %arg4: memref<1x128xf32, #tpu.memory_space<vmem>>) attributes {dimension_semantics = [#tpu.dimension_semantics<parallel>], iteration_bounds = array<i64: 1>, scalar_prefetch = 0 : i64, scratch_operands = 0 : i64, tpu.core_type = #tpu.core_type<tc>, window_params = [{transform_indices = @transform_0, window_bounds = array<i64: 1>}, {transform_indices = @transform_1, window_bounds = array<i64: 4, 128>}, {pipeline_mode = #tpu.pipeline_mode<synchronous>, transform_indices = @transform_2, window_bounds = array<i64: 40, 18>}, {transform_indices = @transform_3, window_bounds = array<i64: 1, 128>}]} {
    %c0 = arith.constant 0 : index
    %c0_0 = arith.constant 0 : index
    %0 = vector.load %arg2[%c0, %c0_0] : memref<4x128xi32, #tpu.memory_space<vmem>>, vector<4x128xi32>
    %1 = tpu.iota {dimensions = array<i32: 0>} : vector<18x128xi32>
    %cst = arith.constant 0.000000e+00 : f32
    %2 = vector.broadcast %cst : f32 to vector<18x128xf32>
    %3 = vector.extract_strided_slice %0 {offsets = [0, 0], sizes = [1, 128], strides = [1, 1]} : vector<4x128xi32> to vector<1x128xi32>
    %4 = vector.broadcast %3 : vector<1x128xi32> to vector<18x128xi32>
    %5 = arith.cmpi eq, %1, %4 : vector<18x128xi32>
    %6 = arith.extui %5 : vector<18x128xi1> to vector<18x128xi32>
    %7 = arith.sitofp %6 : vector<18x128xi32> to vector<18x128xf32>
    %8 = arith.addf %2, %7 : vector<18x128xf32>
    %9 = vector.extract_strided_slice %0 {offsets = [1, 0], sizes = [1, 128], strides = [1, 1]} : vector<4x128xi32> to vector<1x128xi32>
    %10 = vector.broadcast %9 : vector<1x128xi32> to vector<18x128xi32>
    %11 = arith.cmpi eq, %1, %10 : vector<18x128xi32>
    %12 = arith.extui %11 : vector<18x128xi1> to vector<18x128xi32>
    %13 = arith.sitofp %12 : vector<18x128xi32> to vector<18x128xf32>
    %14 = arith.addf %8, %13 : vector<18x128xf32>
    %15 = vector.extract_strided_slice %0 {offsets = [2, 0], sizes = [1, 128], strides = [1, 1]} : vector<4x128xi32> to vector<1x128xi32>
    %16 = vector.broadcast %15 : vector<1x128xi32> to vector<18x128xi32>
    %17 = arith.cmpi eq, %1, %16 : vector<18x128xi32>
    %18 = arith.extui %17 : vector<18x128xi1> to vector<18x128xi32>
    %19 = arith.sitofp %18 : vector<18x128xi32> to vector<18x128xf32>
    %20 = arith.addf %14, %19 : vector<18x128xf32>
    %21 = vector.extract_strided_slice %0 {offsets = [3, 0], sizes = [1, 128], strides = [1, 1]} : vector<4x128xi32> to vector<1x128xi32>
    %22 = vector.broadcast %21 : vector<1x128xi32> to vector<18x128xi32>
    %23 = arith.cmpi eq, %1, %22 : vector<18x128xi32>
    %24 = arith.extui %23 : vector<18x128xi1> to vector<18x128xi32>
    %25 = arith.sitofp %24 : vector<18x128xi32> to vector<18x128xf32>
    %26 = arith.addf %20, %25 : vector<18x128xf32>
    %c0_1 = arith.constant 0 : index
    %c0_2 = arith.constant 0 : index
    %27 = vector.load %arg3[%c0_1, %c0_2] : memref<40x18xf32, #tpu.memory_space<vmem>>, vector<40x18xf32>
    %cst_3 = arith.constant dense<0.000000e+00> : vector<40x128xf32>
    %28 = tpu.matmul %27, %26, %cst_3 {dimension_numbers = #tpu.dot_dimension_numbers<[1], [0], [0], [1], [0, 0, 1, 1], [], []>} : vector<40x18xf32>, vector<18x128xf32>, vector<40x128xf32> -> vector<40x128xf32>
    %29 = vector.extract_strided_slice %28 {offsets = [0, 0], sizes = [32, 128], strides = [1, 1]} : vector<40x128xf32> to vector<32x128xf32>
    %30 = vector.extract_strided_slice %28 {offsets = [32, 0], sizes = [1, 128], strides = [1, 1]} : vector<40x128xf32> to vector<1x128xf32>
    %31 = vector.extract_strided_slice %28 {offsets = [33, 0], sizes = [1, 128], strides = [1, 1]} : vector<40x128xf32> to vector<1x128xf32>
    %32 = arith.mulf %29, %29 : vector<32x128xf32>
    %cst_4 = arith.constant dense<0.000000e+00> : vector<128xf32>
    %33 = vector.multi_reduction <add>, %32, %cst_4 [0] : vector<32x128xf32> to vector<128xf32>
    %34 = vector.shape_cast %33 : vector<128xf32> to vector<1x128xf32>
    %35 = arith.subf %34, %31 : vector<1x128xf32>
    %cst_5 = arith.constant 5.000000e-01 : f32
    %36 = vector.broadcast %cst_5 : f32 to vector<1x128xf32>
    %37 = arith.mulf %36, %35 : vector<1x128xf32>
    %38 = arith.addf %30, %37 : vector<1x128xf32>
    %c0_6 = arith.constant 0 : index
    %39 = memref.load %arg1[%c0_6] : memref<1xf32, #tpu.memory_space<smem>>
    %40 = vector.broadcast %39 : f32 to vector<1x128xf32>
    %41 = arith.addf %38, %40 : vector<1x128xf32>
    %42 = arith.negf %41 : vector<1x128xf32>
    %43 = math.exp %42 : vector<1x128xf32>
    %cst_7 = arith.constant 1.000000e+00 : f32
    %44 = vector.broadcast %cst_7 : f32 to vector<1x128xf32>
    %45 = arith.addf %44, %43 : vector<1x128xf32>
    %46 = arith.divf %44, %45 : vector<1x128xf32>
    %c0_8 = arith.constant 0 : index
    %c0_9 = arith.constant 0 : index
    %47 = vector.load %arg4[%c0_8, %c0_9] : memref<1x128xf32, #tpu.memory_space<vmem>>, vector<1x128xf32>
    tpu.vector_store %arg4[%c0_8, %c0_9], %46 {strides = array<i32>} : memref<1x128xf32, #tpu.memory_space<vmem>>, vector<1x128xf32>,
    return
  }
  func.func @transform_0(%arg0: i32) -> i32 {
    %c0_i32 = arith.constant 0 : i32
    %c0_i32_0 = arith.constant 0 : i32
    return %c0_i32 : i32
  }
  func.func @transform_1(%arg0: i32) -> (i32, i32) {
    %c0_i32 = arith.constant 0 : i32
    %c0_i32_0 = arith.constant 0 : i32
    return %c0_i32, %arg0 : i32, i32
  }
  func.func @transform_2(%arg0: i32) -> (i32, i32) {
    %c0_i32 = arith.constant 0 : i32
    %c0_i32_0 = arith.constant 0 : i32
    %c0_i32_1 = arith.constant 0 : i32
    return %c0_i32, %c0_i32_0 : i32, i32
  }
  func.func @transform_3(%arg0: i32) -> (i32, i32) {
    %c0_i32 = arith.constant 0 : i32
    %c0_i32_0 = arith.constant 0 : i32
    return %c0_i32, %arg0 : i32, i32
  }
}

module attributes {stable_mosaic.version = 11 : i64} {
  func.func @fm_kernel(%arg0: i32, %arg1: memref<1xf32, #tpu.memory_space<smem>>, %arg2: memref<4x128xi32, #tpu.memory_space<vmem>>, %arg3: memref<40x18xf32, #tpu.memory_space<vmem>>, %arg4: memref<1x128xf32, #tpu.memory_space<vmem>>) attributes {dimension_semantics = [#tpu.dimension_semantics<parallel>], iteration_bounds = array<i64: 1>, scalar_prefetch = 0 : i64, scratch_operands = 0 : i64, tpu.core_type = #tpu.core_type<tc>, window_params = [{transform_indices = @transform_0, window_bounds = array<i64: 1>}, {transform_indices = @transform_1, window_bounds = array<i64: 4, 128>}, {pipeline_mode = #tpu.pipeline_mode<synchronous>, transform_indices = @transform_2, window_bounds = array<i64: 40, 18>}, {transform_indices = @transform_3, window_bounds = array<i64: 1, 128>}]} {
    %c0 = arith.constant 0 : index
    %c0_0 = arith.constant 0 : index
    %0 = vector.load %arg2[%c0, %c0_0] : memref<4x128xi32, #tpu.memory_space<vmem>>, vector<4x128xi32>
    %1 = tpu.iota {dimensions = array<i32: 0>} : vector<18x128xi32>
    %cst = arith.constant 0.000000e+00 : f32
    %2 = vector.broadcast %cst : f32 to vector<18x128xf32>
    %3 = vector.extract_strided_slice %0 {offsets = [0, 0], sizes = [1, 128], strides = [1, 1]} : vector<4x128xi32> to vector<1x128xi32>
    %4 = vector.broadcast %3 : vector<1x128xi32> to vector<18x128xi32>
    %5 = arith.cmpi eq, %1, %4 : vector<18x128xi32>
    %6 = arith.extui %5 : vector<18x128xi1> to vector<18x128xi32>
    %7 = arith.sitofp %6 : vector<18x128xi32> to vector<18x128xf32>
    %8 = arith.addf %2, %7 : vector<18x128xf32>
    %9 = vector.extract_strided_slice %0 {offsets = [1, 0], sizes = [1, 128], strides = [1, 1]} : vector<4x128xi32> to vector<1x128xi32>
    %10 = vector.broadcast %9 : vector<1x128xi32> to vector<18x128xi32>
    %11 = arith.cmpi eq, %1, %10 : vector<18x128xi32>
    %12 = arith.extui %11 : vector<18x128xi1> to vector<18x128xi32>
    %13 = arith.sitofp %12 : vector<18x128xi32> to vector<18x128xf32>
    %14 = arith.addf %8, %13 : vector<18x128xf32>
    %15 = vector.extract_strided_slice %0 {offsets = [2, 0], sizes = [1, 128], strides = [1, 1]} : vector<4x128xi32> to vector<1x128xi32>
    %16 = vector.broadcast %15 : vector<1x128xi32> to vector<18x128xi32>
    %17 = arith.cmpi eq, %1, %16 : vector<18x128xi32>
    %18 = arith.extui %17 : vector<18x128xi1> to vector<18x128xi32>
    %19 = arith.sitofp %18 : vector<18x128xi32> to vector<18x128xf32>
    %20 = arith.addf %14, %19 : vector<18x128xf32>
    %21 = vector.extract_strided_slice %0 {offsets = [3, 0], sizes = [1, 128], strides = [1, 1]} : vector<4x128xi32> to vector<1x128xi32>
    %22 = vector.broadcast %21 : vector<1x128xi32> to vector<18x128xi32>
    %23 = arith.cmpi eq, %1, %22 : vector<18x128xi32>
    %24 = arith.extui %23 : vector<18x128xi1> to vector<18x128xi32>
    %25 = arith.sitofp %24 : vector<18x128xi32> to vector<18x128xf32>
    %26 = arith.addf %20, %25 : vector<18x128xf32>
    %c0_1 = arith.constant 0 : index
    %c0_2 = arith.constant 0 : index
    %27 = vector.load %arg3[%c0_1, %c0_2] : memref<40x18xf32, #tpu.memory_space<vmem>>, vector<40x18xf32>
    %cst_3 = arith.constant dense<0.000000e+00> : vector<40x128xf32>
    %28 = tpu.matmul %27, %26, %cst_3 {dimension_numbers = #tpu.dot_dimension_numbers<[1], [0], [0], [1], [0, 0, 1, 1], [], []>} : vector<40x18xf32>, vector<18x128xf32>, vector<40x128xf32> -> vector<40x128xf32>
    %29 = vector.extract_strided_slice %28 {offsets = [0, 0], sizes = [32, 128], strides = [1, 1]} : vector<40x128xf32> to vector<32x128xf32>
    %30 = vector.extract_strided_slice %28 {offsets = [32, 0], sizes = [1, 128], strides = [1, 1]} : vector<40x128xf32> to vector<1x128xf32>
    %31 = vector.extract_strided_slice %28 {offsets = [33, 0], sizes = [1, 128], strides = [1, 1]} : vector<40x128xf32> to vector<1x128xf32>
    %32 = arith.mulf %29, %29 : vector<32x128xf32>
    %cst_4 = arith.constant dense<0.000000e+00> : vector<128xf32>
    %33 = vector.multi_reduction <add>, %32, %cst_4 [0] : vector<32x128xf32> to vector<128xf32>
    %34 = vector.shape_cast %33 : vector<128xf32> to vector<1x128xf32>
    %35 = arith.subf %34, %31 : vector<1x128xf32>
    %cst_5 = arith.constant 5.000000e-01 : f32
    %36 = vector.broadcast %cst_5 : f32 to vector<1x128xf32>
    %37 = arith.mulf %36, %35 : vector<1x128xf32>
    %38 = arith.addf %30, %37 : vector<1x128xf32>
    %c0_6 = arith.constant 0 : index
    %39 = memref.load %arg1[%c0_6] : memref<1xf32, #tpu.memory_space<smem>>
    %40 = vector.broadcast %39 : f32 to vector<1x128xf32>
    %41 = arith.addf %38, %40 : vector<1x128xf32>
    %42 = arith.negf %41 : vector<1x128xf32>
    %43 = math.exp %42 : vector<1x128xf32>
    %cst_7 = arith.constant 1.000000e+00 : f32
    %44 = vector.broadcast %cst_7 : f32 to vector<1x128xf32>
    %45 = arith.addf %44, %43 : vector<1x128xf32>
    %46 = arith.divf %44, %45 : vector<1x128xf32>
    %c0_8 = arith.constant 0 : index
    %c0_9 = arith.constant 0 : index
    %47 = vector.load %arg4[%c0_8, %c0_9] : memref<1x128xf32, #tpu.memory_space<vmem>>, vector<1x128xf32>
    tpu.vector_store %arg4[%c0_8, %c0_9], %46 {strides = array<i32>} : memref<1x128xf32, #tpu.memory_space<vmem>>, vector<1x128xf32>,
    return
  }
  func.func @transform_0(%arg0: i32) -> i32 {
    %c0_i32 = arith.constant 0 : i32
    %c0_i32_0 = arith.constant 0 : i32
    return %c0_i32 : i32
  }
  func.func @transform_1(%arg0: i32) -> (i32, i32) {
    %c0_i32 = arith.constant 0 : i32
    %c0_i32_0 = arith.constant 0 : i32
    return %c0_i32, %arg0 : i32, i32
  }
  func.func @transform_2(%arg0: i32) -> (i32, i32) {
    %c0_i32 = arith.constant 0 : i32
    %c0_i32_0 = arith.constant 0 : i32
    %c0_i32_1 = arith.constant 0 : i32
    return %c0_i32, %c0_i32_0 : i32, i32
  }
  func.func @transform_3(%arg0: i32) -> (i32, i32) {
    %c0_i32 = arith.constant 0 : i32
    %c0_i32_0 = arith.constant 0 : i32
    return %c0_i32, %arg0 : i32, i32
  }
}

</mosaic_0001>

<bundles_post_ra>
// kernel: tpu_custom_call.1
= control target key start
LH: loop header
LB: loop body
LE: loop exit
PB: predicated region body
PF: predicated region fallthrough
CT: control target
= control target key end

     0   :  { %v17_v0 = vlaneseq  ;;  %v330_v1 = vmov 0.0|0.0   ;;  %vm331_vm0 = vmmov 0   ;;  %v332_v3 = vmov 0.0   ;;  %s411_s0 = inlined_call_operand.<no memory space> [shape: f32[1], index: 0, kind: input, shape index: {}]   ;;  %s412_s1 = inlined_call_operand.vmem [shape: s32[4,128], index: 1, kind: input, shape index: {}]   ;;  %s413_s2 = inlined_call_operand.vmem [shape: f32[40,18], index: 2, kind: input, shape index: {}]   ;;  %s414_s3 = inlined_call_operand.hbm [shape: f32[1,128], index: 3, kind: output, shape index: {}]  }
   0x1   :  { %291 = vmatprep.subr.bf16.mxu0 %v330_v1  ;;  %294 = vmatprep.subr.bf16.mxu1 %v330_v1 }
   0x2   :  { %v18_v2 = vshrl.u32 %v17_v0, 7  ;;  %276 = vmatprep.mubr.msk.f32.mxu0 %vm331_vm0, %v332_v3  ;;  %285 = vmatprep.mubr.msk.f32.mxu1 %vm331_vm0, %v332_v3 }
   0x3   :  { %9 = vsyncpa [#allocation4], 0  ;;  %v16_v4 = vld [vmem:[%s412_s1] sm:$0xf]  ;;  %vm106_vm13 = vcmask 1041408   ;;  %vm90_vm14 = vcmask 146432  }
   0x4   :  { %v19_v5 = vadd.s32 8, %v18_v2  ;;  %v23_v6 = vsub.s32 0, %v18_v2  ;;  %v39_v7 = vsub.s32 1, %v18_v2  ;;  %v55_v8 = vsub.s32 2, %v18_v2  ;;  %v85_v37 = vld [vmem:[%s413_s2] sm:$0xff]  ;;  %v88_v38 = vld [vmem:[%s413_s2 + $0x18] sm:$0xff] }
   0x5   :  { %v71_v9 = vsub.s32 3, %v18_v2  ;;  %v20_v14 = vadd.s32 16, %v18_v2  ;;  %v86_v39 = vld [vmem:[%s413_s2 + $0x8] sm:$0xff]  ;;  %v89_v40 = vld [vmem:[%s413_s2 + $0x20] sm:$0xff]  ;;  %v87_v41 = vld [vmem:[%s413_s2 + $0x10] sm:$0xff]  ;;  %s333_s24 = smov [#allocation3]  }
   0x6   :  { %v24_v10 = vrot.slane %v16_v4, %v23_v6  ;;  %v40_v11 = vrot.slane %v16_v4, %v39_v7  ;;  %v56_v12 = vrot.slane %v16_v4, %v55_v8  ;;  %s235_s25 = sshll.u32 %s333_s24, 4  ;;  %s236_s25 = int_to_ptr.vmem [resolvable:$true] %s235_s25 }
   0x7   :  { %v72_v13 = vrot.slane %v16_v4, %v71_v9  ;;  %v220_v4 = vstv %s411_s0  ;;  %s306_s26 = scalar_lea.vmem %s236_s25, 16  ;;  %s310_s27 = scalar_lea.vmem %s236_s25, 32 }
   0x8   :  { %vm25_vm1 = vcmp.eq.s32.totalorder %v18_v2, %v24_v10  ;;  %vm26_vm2 = vcmp.eq.s32.totalorder %v19_v5, %v24_v10  ;;  %vm41_vm3 = vcmp.eq.s32.totalorder %v18_v2, %v40_v11  ;;  %vm42_vm4 = vcmp.eq.s32.totalorder %v19_v5, %v40_v11  ;;  %p307_p0 = scmp.ne.s32.totalorder %s236_s25, %s306_s26  ;;  %p311_p1 = scmp.lt.s32.totalorder %s236_s25, %s236_s25 }
   0x9   :  { %v243_v15 = vsel %vm25_vm1, 1.0, %v332_v3  ;;  %v244_v16 = vsel %vm26_vm2, 1.0, %v332_v3  ;;  %v246_v17 = vsel %vm41_vm3, 1.0, %v332_v3  ;;  %v247_v18 = vsel %vm42_vm4, 1.0, %v332_v3  ;;  %p312_p2 = scmp.lt.s32.totalorder %s310_s27, %s306_s26 }
   0xa   :  { %v50_v19 = vadd.f32 %v246_v17, %v243_v15  ;;  %v51_v20 = vadd.f32 %v247_v18, %v244_v16  ;;  %vm57_vm5 = vcmp.eq.s32.totalorder %v18_v2, %v56_v12  ;;  %vm58_vm6 = vcmp.eq.s32.totalorder %v19_v5, %v56_v12 }
   0xb   :  { %v249_v21 = vsel %vm57_vm5, 1.0, %v332_v3  ;;  %v250_v22 = vsel %vm58_vm6, 1.0, %v332_v3  ;;  %vm73_vm7 = vcmp.eq.s32.totalorder %v18_v2, %v72_v13  ;;  %vm74_vm8 = vcmp.eq.s32.totalorder %v19_v5, %v72_v13  ;;  %p313_p3 = por %p312_p2, %p311_p1 }
   0xc   :  { %v66_v23 = vadd.f32 %v249_v21, %v50_v19  ;;  %v67_v24 = vadd.f32 %v250_v22, %v51_v20  ;;  %v252_v25 = vsel %vm73_vm7, 1.0, %v332_v3  ;;  %v253_v26 = vsel %vm74_vm8, 1.0, %v332_v3 }
   0xd   :  { %vm27_vm9 = vcmp.eq.s32.totalorder %v20_v14, %v24_v10  ;;  %vm43_vm10 = vcmp.eq.s32.totalorder %v20_v14, %v40_v11  ;;  %vm59_vm11 = vcmp.eq.s32.totalorder %v20_v14, %v56_v12  ;;  %vm75_vm12 = vcmp.eq.s32.totalorder %v20_v14, %v72_v13  ;;  %p314_p4 = pnand %p313_p3, %p307_p0 }
   0xe   :  { %v82_v27 = vadd.f32 %v252_v25, %v66_v23  ;;  %v83_v28 = vadd.f32 %v253_v26, %v67_v24  ;;  %v245_v29 = vsel %vm27_vm9, 1.0, %v332_v3  ;;  %v248_v30 = vsel %vm43_vm10, 1.0, %v332_v3 }
   0xf   :  { %v52_v31 = vadd.f32 %v248_v30, %v245_v29  ;;  %v251_v32 = vsel %vm59_vm11, 1.0, %v332_v3  ;;  %v254_v34 = vsel %vm75_vm12, 1.0, %v332_v3 }
  0x10   :  { %v292_v33 = vpack.c.bf16 %v83_v28, %v82_v27 }
  0x11   :  { %v68_v35 = vadd.f32 %v251_v32, %v52_v31 }
  0x12   :  { %293 = vmatpush3.bf16.msra.mxu0 %v292_v33  ;;  %296 = vmatpush3.bf16.msra.mxu1 %v292_v33 }
  0x13   :  { %274 = vmatprep.subr.mxu0 %v332_v3  ;;  %v84_v36 = vadd.f32 %v254_v34, %v68_v35  ;;  %295 = vmatprep.subr.mxu1 %v332_v3 }
  0x16   :  { %275 = vmatpush3.msk.msra.mxu0 %vm106_vm13, %v84_v36  ;;  %297 = vmatpush3.msk.msra.mxu1 %vm106_vm13, %v84_v36 }
  0x17   :  { %277 = vmatmul.mubr.msk.f32.vlgmr.msra.gmra.mrb[0].mxu0 %vm90_vm14, %v85_v37  ;;  %286 = vmatmul.mubr.msk.f32.vlgmr.msra.gmra.mrb[0].mxu1 %vm90_vm14, %v88_v38 }
  0x18   :  { %279 = vmatprep.mubr.msk.f32.mxu0 %vm331_vm0, %v332_v3  ;;  %288 = vmatprep.mubr.msk.f32.mxu1 %vm331_vm0, %v332_v3 }
  0x1b   :  { %280 = vmatmul.mubr.msk.f32.gmra.mrb[2].mxu0 %vm90_vm14, %v86_v39  ;;  %289 = vmatmul.mubr.msk.f32.gmra.mrb[2].mxu1 %vm90_vm14, %v89_v40 }
  0x1c   :  { %282 = vmatprep.mubr.msk.f32.mxu0 %vm331_vm0, %v332_v3 }
  0x1f   :  { %283 = vmatmul.mubr.msk.f32.gmra.mrb[4].mxu0 %vm90_vm14, %v87_v41 }
  0xea   :  { %v176_v42 = vpop.f32.mrb[0].mxu0  ;;  %v191_v43 = vpop.f32.mrb[0].mxu1 }
  0xeb   :  { %v278_v44 = vpop.f32.mrb[1].mxu0  ;;  %v287_v45 = vpop.f32.mrb[1].mxu1  ;;  %v200_v48 = vmul.f32 %v176_v42, %v176_v42  ;;  %v203_v56 = vmul.f32 %v191_v43, %v191_v43 }
  0xee   :  { %v181_v46 = vpop.f32.mrb[2].mxu0  ;;  %v196_v47 = vpop.f32.mrb[2].mxu1 }
  0xef   :  { %v201_v49 = vmul.f32 %v181_v46, %v181_v46  ;;  %v281_v50 = vpop.f32.mrb[3].mxu0  ;;  %v290_v51 = vpop.f32.mrb[3].mxu1 }
  0xf1   :  { %v204_v52 = vadd.f32 %v201_v49, %v200_v48 }
  0xf2   :  { %v186_v53 = vpop.f32.mrb[4].mxu0 }
  0xf3   :  { %v202_v54 = vmul.f32 %v186_v53, %v186_v53  ;;  %v284_v55 = vpop.f32.mrb[5].mxu0 }
  0xf5   :  { %v205_v57 = vadd.f32 %v204_v52, %v202_v54 }
  0xf7   :  { %v206_v58 = vadd.f32 %v205_v57, %v203_v56 }
  0xf9   :  { %v207_v59 = vrot.slane %v206_v58, 4 }
  0xfb   :  { %v208_v60 = vadd.f32 %v207_v59, %v206_v58 }
  0xfd   :  { %v209_v61 = vrot.slane %v208_v60, 2 }
  0xff   :  { %v210_v62 = vadd.f32 %v209_v61, %v208_v60 }
 0x101   :  { %v211_v63 = vrot.slane %v210_v62, 1 }
 0x103   :  { %v212_v0 = vadd.f32 %v211_v63, %v210_v62 }
 0x105   :  { %v213_v1 = vsub.f32 %v212_v0, %v196_v47 }
 0x107   :  { %v214_v2 = vmul.f32 0.5, %v213_v1 }
 0x109   :  { %v216_v3 = vrot.slane %v214_v2, 1 }
 0x10b   :  { %v218_v5 = vadd.f32 %v216_v3, %v196_v47 }
 0x10d   :  { %v221_v6 = vadd.f32 %v220_v4, %v218_v5 }
 0x10f   :  { %v261_v7 = vmul.f32 -1.442695, %v221_v6 }
 0x111   :  { %302 = vpow2.f32 %v261_v7 }
 0x11b   :  { %v303_v8 = vpop.eup %302 }
 0x11c   :  { %v225_v9 = vadd.f32 1.0, %v303_v8 }
 0x11e   :  { %304 = vrcp.f32 %v225_v9 }
 0x128   :  { %v305_v10 = vpop.eup %304 }
 0x129   :  { %228 = vst [vmem:[#allocation3] sm:$0x1] %v305_v10 }
 0x12a   :  { %317 = shalt.err (!%p314_p4)
}
 0x12b   :  { %s318_s29 = scalar_lea.hbm %s414_s3, 16 }
 0x12c   :  { %p319_p5 = scmp.ne.s32.totalorder %s414_s3, %s318_s29  ;;  %p322_p6 = scmp.lt.u32.totalorder %s318_s29, %s414_s3 }
 0x12e   :  { %p324_p7 = pnand %p322_p6, %p319_p5 }
 0x130   :  { %327 = shalt.err (!%p324_p7)
}
 0x131   :  { %238 = dma.vmem_to_hbm [thread:$0]  %s236_s25, 16, %s414_s3, [#allocation4]  }
 0x132   :  { %328 = dma.done.wait [#allocation4], 16  }
 0x133   :  { %329 = vsyncadd [#allocation4], 4294967280 }
 0x134   :  { %242 = vsyncpa [#allocation4], 1 }

// kernel: tpu_custom_call.1
= control target key start
LH: loop header
LB: loop body
LE: loop exit
PB: predicated region body
PF: predicated region fallthrough
CT: control target
= control target key end

     0   :  { %v17_v0 = vlaneseq  ;;  %v330_v1 = vmov 0.0|0.0   ;;  %vm331_vm0 = vmmov 0   ;;  %v332_v3 = vmov 0.0   ;;  %s411_s0 = inlined_call_operand.<no memory space> [shape: f32[1], index: 0, kind: input, shape index: {}]   ;;  %s412_s1 = inlined_call_operand.vmem [shape: s32[4,128], index: 1, kind: input, shape index: {}]   ;;  %s413_s2 = inlined_call_operand.vmem [shape: f32[40,18], index: 2, kind: input, shape index: {}]   ;;  %s414_s3 = inlined_call_operand.hbm [shape: f32[1,128], index: 3, kind: output, shape index: {}]  }
   0x1   :  { %291 = vmatprep.subr.bf16.mxu0 %v330_v1  ;;  %294 = vmatprep.subr.bf16.mxu1 %v330_v1 }
   0x2   :  { %v18_v2 = vshrl.u32 %v17_v0, 7  ;;  %276 = vmatprep.mubr.msk.f32.mxu0 %vm331_vm0, %v332_v3  ;;  %285 = vmatprep.mubr.msk.f32.mxu1 %vm331_vm0, %v332_v3 }
   0x3   :  { %9 = vsyncpa [#allocation4], 0  ;;  %v16_v4 = vld [vmem:[%s412_s1] sm:$0xf]  ;;  %vm106_vm13 = vcmask 1041408   ;;  %vm90_vm14 = vcmask 146432  }
   0x4   :  { %v19_v5 = vadd.s32 8, %v18_v2  ;;  %v23_v6 = vsub.s32 0, %v18_v2  ;;  %v39_v7 = vsub.s32 1, %v18_v2  ;;  %v55_v8 = vsub.s32 2, %v18_v2  ;;  %v85_v37 = vld [vmem:[%s413_s2] sm:$0xff]  ;;  %v88_v38 = vld [vmem:[%s413_s2 + $0x18] sm:$0xff] }
   0x5   :  { %v71_v9 = vsub.s32 3, %v18_v2  ;;  %v20_v14 = vadd.s32 16, %v18_v2  ;;  %v86_v39 = vld [vmem:[%s413_s2 + $0x8] sm:$0xff]  ;;  %v89_v40 = vld [vmem:[%s413_s2 + $0x20] sm:$0xff]  ;;  %v87_v41 = vld [vmem:[%s413_s2 + $0x10] sm:$0xff]  ;;  %s333_s24 = smov [#allocation3]  }
   0x6   :  { %v24_v10 = vrot.slane %v16_v4, %v23_v6  ;;  %v40_v11 = vrot.slane %v16_v4, %v39_v7  ;;  %v56_v12 = vrot.slane %v16_v4, %v55_v8  ;;  %s235_s25 = sshll.u32 %s333_s24, 4  ;;  %s236_s25 = int_to_ptr.vmem [resolvable:$true] %s235_s25 }
   0x7   :  { %v72_v13 = vrot.slane %v16_v4, %v71_v9  ;;  %v220_v4 = vstv %s411_s0  ;;  %s306_s26 = scalar_lea.vmem %s236_s25, 16  ;;  %s310_s27 = scalar_lea.vmem %s236_s25, 32 }
   0x8   :  { %vm25_vm1 = vcmp.eq.s32.totalorder %v18_v2, %v24_v10  ;;  %vm26_vm2 = vcmp.eq.s32.totalorder %v19_v5, %v24_v10  ;;  %vm41_vm3 = vcmp.eq.s32.totalorder %v18_v2, %v40_v11  ;;  %vm42_vm4 = vcmp.eq.s32.totalorder %v19_v5, %v40_v11  ;;  %p307_p0 = scmp.ne.s32.totalorder %s236_s25, %s306_s26  ;;  %p311_p1 = scmp.lt.s32.totalorder %s236_s25, %s236_s25 }
   0x9   :  { %v243_v15 = vsel %vm25_vm1, 1.0, %v332_v3  ;;  %v244_v16 = vsel %vm26_vm2, 1.0, %v332_v3  ;;  %v246_v17 = vsel %vm41_vm3, 1.0, %v332_v3  ;;  %v247_v18 = vsel %vm42_vm4, 1.0, %v332_v3  ;;  %p312_p2 = scmp.lt.s32.totalorder %s310_s27, %s306_s26 }
   0xa   :  { %v50_v19 = vadd.f32 %v246_v17, %v243_v15  ;;  %v51_v20 = vadd.f32 %v247_v18, %v244_v16  ;;  %vm57_vm5 = vcmp.eq.s32.totalorder %v18_v2, %v56_v12  ;;  %vm58_vm6 = vcmp.eq.s32.totalorder %v19_v5, %v56_v12 }
   0xb   :  { %v249_v21 = vsel %vm57_vm5, 1.0, %v332_v3  ;;  %v250_v22 = vsel %vm58_vm6, 1.0, %v332_v3  ;;  %vm73_vm7 = vcmp.eq.s32.totalorder %v18_v2, %v72_v13  ;;  %vm74_vm8 = vcmp.eq.s32.totalorder %v19_v5, %v72_v13  ;;  %p313_p3 = por %p312_p2, %p311_p1 }
   0xc   :  { %v66_v23 = vadd.f32 %v249_v21, %v50_v19  ;;  %v67_v24 = vadd.f32 %v250_v22, %v51_v20  ;;  %v252_v25 = vsel %vm73_vm7, 1.0, %v332_v3  ;;  %v253_v26 = vsel %vm74_vm8, 1.0, %v332_v3 }
   0xd   :  { %vm27_vm9 = vcmp.eq.s32.totalorder %v20_v14, %v24_v10  ;;  %vm43_vm10 = vcmp.eq.s32.totalorder %v20_v14, %v40_v11  ;;  %vm59_vm11 = vcmp.eq.s32.totalorder %v20_v14, %v56_v12  ;;  %vm75_vm12 = vcmp.eq.s32.totalorder %v20_v14, %v72_v13  ;;  %p314_p4 = pnand %p313_p3, %p307_p0 }
   0xe   :  { %v82_v27 = vadd.f32 %v252_v25, %v66_v23  ;;  %v83_v28 = vadd.f32 %v253_v26, %v67_v24  ;;  %v245_v29 = vsel %vm27_vm9, 1.0, %v332_v3  ;;  %v248_v30 = vsel %vm43_vm10, 1.0, %v332_v3 }
   0xf   :  { %v52_v31 = vadd.f32 %v248_v30, %v245_v29  ;;  %v251_v32 = vsel %vm59_vm11, 1.0, %v332_v3  ;;  %v254_v34 = vsel %vm75_vm12, 1.0, %v332_v3 }
  0x10   :  { %v292_v33 = vpack.c.bf16 %v83_v28, %v82_v27 }
  0x11   :  { %v68_v35 = vadd.f32 %v251_v32, %v52_v31 }
  0x12   :  { %293 = vmatpush3.bf16.msra.mxu0 %v292_v33  ;;  %296 = vmatpush3.bf16.msra.mxu1 %v292_v33 }
  0x13   :  { %274 = vmatprep.subr.mxu0 %v332_v3  ;;  %v84_v36 = vadd.f32 %v254_v34, %v68_v35  ;;  %295 = vmatprep.subr.mxu1 %v332_v3 }
  0x16   :  { %275 = vmatpush3.msk.msra.mxu0 %vm106_vm13, %v84_v36  ;;  %297 = vmatpush3.msk.msra.mxu1 %vm106_vm13, %v84_v36 }
  0x17   :  { %277 = vmatmul.mubr.msk.f32.vlgmr.msra.gmra.mrb[0].mxu0 %vm90_vm14, %v85_v37  ;;  %286 = vmatmul.mubr.msk.f32.vlgmr.msra.gmra.mrb[0].mxu1 %vm90_vm14, %v88_v38 }
  0x18   :  { %279 = vmatprep.mubr.msk.f32.mxu0 %vm331_vm0, %v332_v3  ;;  %288 = vmatprep.mubr.msk.f32.mxu1 %vm331_vm0, %v332_v3 }
  0x1b   :  { %280 = vmatmul.mubr.msk.f32.gmra.mrb[2].mxu0 %vm90_vm14, %v86_v39  ;;  %289 = vmatmul.mubr.msk.f32.gmra.mrb[2].mxu1 %vm90_vm14, %v89_v40 }
  0x1c   :  { %282 = vmatprep.mubr.msk.f32.mxu0 %vm331_vm0, %v332_v3 }
  0x1f   :  { %283 = vmatmul.mubr.msk.f32.gmra.mrb[4].mxu0 %vm90_vm14, %v87_v41 }
  0xea   :  { %v176_v42 = vpop.f32.mrb[0].mxu0  ;;  %v191_v43 = vpop.f32.mrb[0].mxu1 }
  0xeb   :  { %v278_v44 = vpop.f32.mrb[1].mxu0  ;;  %v287_v45 = vpop.f32.mrb[1].mxu1  ;;  %v200_v48 = vmul.f32 %v176_v42, %v176_v42  ;;  %v203_v56 = vmul.f32 %v191_v43, %v191_v43 }
  0xee   :  { %v181_v46 = vpop.f32.mrb[2].mxu0  ;;  %v196_v47 = vpop.f32.mrb[2].mxu1 }
  0xef   :  { %v201_v49 = vmul.f32 %v181_v46, %v181_v46  ;;  %v281_v50 = vpop.f32.mrb[3].mxu0  ;;  %v290_v51 = vpop.f32.mrb[3].mxu1 }
  0xf1   :  { %v204_v52 = vadd.f32 %v201_v49, %v200_v48 }
  0xf2   :  { %v186_v53 = vpop.f32.mrb[4].mxu0 }
  0xf3   :  { %v202_v54 = vmul.f32 %v186_v53, %v186_v53  ;;  %v284_v55 = vpop.f32.mrb[5].mxu0 }
  0xf5   :  { %v205_v57 = vadd.f32 %v204_v52, %v202_v54 }
  0xf7   :  { %v206_v58 = vadd.f32 %v205_v57, %v203_v56 }
  0xf9   :  { %v207_v59 = vrot.slane %v206_v58, 4 }
  0xfb   :  { %v208_v60 = vadd.f32 %v207_v59, %v206_v58 }
  0xfd   :  { %v209_v61 = vrot.slane %v208_v60, 2 }
  0xff   :  { %v210_v62 = vadd.f32 %v209_v61, %v208_v60 }
 0x101   :  { %v211_v63 = vrot.slane %v210_v62, 1 }
 0x103   :  { %v212_v0 = vadd.f32 %v211_v63, %v210_v62 }
 0x105   :  { %v213_v1 = vsub.f32 %v212_v0, %v196_v47 }
 0x107   :  { %v214_v2 = vmul.f32 0.5, %v213_v1 }
 0x109   :  { %v216_v3 = vrot.slane %v214_v2, 1 }
 0x10b   :  { %v218_v5 = vadd.f32 %v216_v3, %v196_v47 }
 0x10d   :  { %v221_v6 = vadd.f32 %v220_v4, %v218_v5 }
 0x10f   :  { %v261_v7 = vmul.f32 -1.442695, %v221_v6 }
 0x111   :  { %302 = vpow2.f32 %v261_v7 }
 0x11b   :  { %v303_v8 = vpop.eup %302 }
 0x11c   :  { %v225_v9 = vadd.f32 1.0, %v303_v8 }
 0x11e   :  { %304 = vrcp.f32 %v225_v9 }
 0x128   :  { %v305_v10 = vpop.eup %304 }
 0x129   :  { %228 = vst [vmem:[#allocation3] sm:$0x1] %v305_v10 }
 0x12a   :  { %317 = shalt.err (!%p314_p4)
}
 0x12b   :  { %s318_s29 = scalar_lea.hbm %s414_s3, 16 }
 0x12c   :  { %p319_p5 = scmp.ne.s32.totalorder %s414_s3, %s318_s29  ;;  %p322_p6 = scmp.lt.u32.totalorder %s318_s29, %s414_s3 }
 0x12e   :  { %p324_p7 = pnand %p322_p6, %p319_p5 }
 0x130   :  { %327 = shalt.err (!%p324_p7)
}
 0x131   :  { %238 = dma.vmem_to_hbm [thread:$0]  %s236_s25, 16, %s414_s3, [#allocation4]  }
 0x132   :  { %328 = dma.done.wait [#allocation4], 16  }
 0x133   :  { %329 = vsyncadd [#allocation4], 4294967280 }
 0x134   :  { %242 = vsyncpa [#allocation4], 1 }

</bundles_post_ra>
